<compile_context>
chip_gen: v5e
topology: v5e:2x2
jax: 0.10.0
libtpu: 0.0.40
codegen_flags: <defaults>
</compile_context>

<pallas_src>
import functools

import jax
import jax.numpy as jnp
from jax.experimental import pallas as pl
from jax.experimental.pallas import tpu as pltpu


def _net1_fused_kernel(x_ref, w_ref, b_ref, o_ref):
    # x_ref: (TB, n_in); w_ref: (n_in, n_out); b_ref: (1, n_out); o_ref: (TB, n_out)
    y = jnp.dot(x_ref[...], w_ref[...], preferred_element_type=jnp.float32)
    y = y + b_ref[...]
    # Final sigmoid (EUP transcendental), single narrow-lane store only here.
    o_ref[...] = jax.nn.sigmoid(y).astype(o_ref.dtype)


def _fold_params(params):
    """Exact fold of the three Linear layers (no inter-layer nonlinearity in
    Net1) into a single affine map.  Weights are stored (in, out), biases (1, out)."""
    w1, b1, w2, b2, w3, b3 = params
    w_eff = (w1 @ w2) @ w3                  # (n_in, n_out)
    b_eff = (b1 @ w2 + b2) @ w3 + b3        # (1, n_out)
    return w_eff, b_eff


def net1_forward_pallas(z, params, *, batch_tile=1024):
    """Fused Net1 forward.  params = (w1, b1, w2, b2, w3, b3) with weights
    stored pre-transposed as (in_features, out_features) and biases as (1, out)."""
    w_eff, b_eff = _fold_params(params)
    B, n_in = z.shape
    n_out = w_eff.shape[1]

    if B <= batch_tile:
        # Single full-extent block for everything; no grid, no pipeline setup.
        return pl.pallas_call(
            _net1_fused_kernel,
            out_shape=jax.ShapeDtypeStruct((B, n_out), z.dtype),
            in_specs=[
                pl.BlockSpec(memory_space=pltpu.MemorySpace.VMEM),
                pl.BlockSpec(memory_space=pltpu.MemorySpace.VMEM),
                pl.BlockSpec(memory_space=pltpu.MemorySpace.VMEM),
            ],
            out_specs=pl.BlockSpec(memory_space=pltpu.MemorySpace.VMEM),
        )(z, w_eff, b_eff)

    # Batch-tiled path: grid over the batch axis only, no padding / slicing.
    # B > tb here, so the grid always has >= 2 steps (feeds both v7x TCs).
    tb = max(8, (batch_tile // 8) * 8)          # keep sublane-aligned tile
    grid = (pl.cdiv(B, tb),)

    return pl.pallas_call(
        _net1_fused_kernel,
        out_shape=jax.ShapeDtypeStruct((B, n_out), z.dtype),
        grid_spec=pl.GridSpec(
            grid=grid,
            in_specs=[
                pl.BlockSpec((tb, n_in), lambda i: (i, 0)),
                # Folded weight/bias: whole-array resident in VMEM, no
                # per-step double buffering.
                pl.BlockSpec(memory_space=pltpu.MemorySpace.VMEM),
                pl.BlockSpec(memory_space=pltpu.MemorySpace.VMEM),
            ],
            out_specs=pl.BlockSpec((tb, n_out), lambda i: (i, 0)),
        ),
        compiler_params=pltpu.CompilerParams(
            dimension_semantics=("parallel",),  # shard batch tiles across TCs (v7x)
        ),
    )(z, w_eff, b_eff)


def init_net1_params(key, n_in, n_out):
    """PyTorch-style init (U(-1/sqrt(fan_in), 1/sqrt(fan_in))) for the three
    Linear layers; weights returned PRE-TRANSPOSED as (in, out), biases (1, out)."""
    dims = [n_in, 10, 5, n_out]
    params = []
    for k in range(len(dims) - 1):
        fan_in, fan_out = dims[k], dims[k + 1]
        key, kw, kb = jax.random.split(key, 3)
        bound = 1.0 / jnp.sqrt(jnp.float32(fan_in))
        # PyTorch stores (out, in); sample that way, then transpose once here.
        w = jax.random.uniform(kw, (fan_out, fan_in), jnp.float32, -bound, bound)
        b = jax.random.uniform(kb, (fan_out,), jnp.float32, -bound, bound)
        params.extend([w.T, b.reshape(1, fan_out)])
    return tuple(params)


@functools.partial(jax.jit, static_argnames=("batch_tile",))
def net1_forward(z, params, batch_tile=1024):
    return net1_forward_pallas(z, params, batch_tile=batch_tile)


def net1_forward_ref(z, params):
    w1, b1, w2, b2, w3, b3 = params
    z = z @ w1 + b1
    z = z @ w2 + b2
    z = z @ w3 + b3
    return jax.nn.sigmoid(z)


if __name__ == "__main__":
    # Small shapes consistent with the module: Net1(n_in=32, n_out=16), batch=8.
    n_in, n_out = 32, 16
    batch = 8

    key = jax.random.PRNGKey(0)
    kx, kx2, kp = jax.random.split(key, 3)
    params = init_net1_params(kp, n_in, n_out)

    # Small-batch path (single fused block, no grid).
    z = jax.random.normal(kx, (batch, n_in), dtype=jnp.float32)
    out = jax.block_until_ready(net1_forward(z, params))
    ref = net1_forward_ref(z, params)
    assert out.shape == (batch, n_out), out.shape
    assert jnp.allclose(out, ref, atol=1e-5, rtol=1e-5), "mismatch (small batch)"

    # Batch-tiled path: non-divisible batch exercises the ragged last block
    # (no pad, no output slice), grid has 4 'parallel' steps.
    big_batch = 1000
    z_big = jax.random.normal(kx2, (big_batch, n_in), dtype=jnp.float32)
    out_big = jax.block_until_ready(net1_forward(z_big, params, batch_tile=256))
    ref_big = net1_forward_ref(z_big, params)
    assert out_big.shape == (big_batch, n_out), out_big.shape
    assert jnp.allclose(out_big, ref_big, atol=1e-5, rtol=1e-5), "mismatch (big batch)"

    print("KERNEL_OK")
</pallas_src>

<mosaic_0001>
module attributes {stable_mosaic.version = 11 : i64} {
  func.func @_net1_fused_kernel(%arg0: memref<8x32xf32, #tpu.memory_space<vmem>>, %arg1: memref<32x16xf32, #tpu.memory_space<vmem>>, %arg2: memref<1x16xf32, #tpu.memory_space<vmem>>, %arg3: memref<8x16xf32, #tpu.memory_space<vmem>>) attributes {dimension_semantics = [], scalar_prefetch = 0 : i64, scratch_operands = 0 : i64, tpu.core_type = #tpu.core_type<tc>} {
    %c0 = arith.constant 0 : index
    %c0_0 = arith.constant 0 : index
    %0 = vector.load %arg0[%c0, %c0_0] : memref<8x32xf32, #tpu.memory_space<vmem>>, vector<8x32xf32>
    %c0_1 = arith.constant 0 : index
    %c0_2 = arith.constant 0 : index
    %1 = vector.load %arg1[%c0_1, %c0_2] : memref<32x16xf32, #tpu.memory_space<vmem>>, vector<32x16xf32>
    %cst = arith.constant dense<0.000000e+00> : vector<8x16xf32>
    %2 = tpu.matmul %0, %1, %cst {dimension_numbers = #tpu.dot_dimension_numbers<[1], [0], [0], [1], [0, 0, 1, 1], [], []>} : vector<8x32xf32>, vector<32x16xf32>, vector<8x16xf32> -> vector<8x16xf32>
    %c0_3 = arith.constant 0 : index
    %c0_4 = arith.constant 0 : index
    %3 = vector.load %arg2[%c0_3, %c0_4] : memref<1x16xf32, #tpu.memory_space<vmem>>, vector<1x16xf32>
    %4 = vector.broadcast %3 : vector<1x16xf32> to vector<8x16xf32>
    %5 = arith.addf %2, %4 : vector<8x16xf32>
    %6 = arith.negf %5 : vector<8x16xf32>
    %7 = math.exp %6 : vector<8x16xf32>
    %cst_5 = arith.constant 1.000000e+00 : f32
    %8 = vector.broadcast %cst_5 : f32 to vector<8x16xf32>
    %9 = arith.addf %8, %7 : vector<8x16xf32>
    %10 = arith.divf %8, %9 : vector<8x16xf32>
    %c0_6 = arith.constant 0 : index
    %c0_7 = arith.constant 0 : index
    %11 = vector.load %arg3[%c0_6, %c0_7] : memref<8x16xf32, #tpu.memory_space<vmem>>, vector<8x16xf32>
    tpu.vector_store %arg3[%c0_6, %c0_7], %10 {strides = array<i32>} : memref<8x16xf32, #tpu.memory_space<vmem>>, vector<8x16xf32>,
    return
  }
}

</mosaic_0001>

<bundles_post_ra>
// kernel: net1_forward.1
= control target key start
LH: loop header
LB: loop body
LE: loop exit
PB: predicated region body
PF: predicated region fallthrough
CT: control target
= control target key end

     0   :  { %s161_s0 = inlined_call_operand.vmem [shape: f32[8,32], index: 0, kind: input, shape index: {}]   ;;  %s162_s1 = inlined_call_operand.vmem [shape: f32[32,16], index: 1, kind: input, shape index: {}]   ;;  %s163_s2 = inlined_call_operand.vmem [shape: f32[1,16], index: 2, kind: input, shape index: {}]   ;;  %s164_s3 = inlined_call_operand.hbm [shape: f32[8,16], index: 3, kind: output, shape index: {}]  }
   0x1   :  { %v19_v0 = vld [vmem:[%s162_s1 + $0x18] sm:$0xff]  ;;  %v18_v1 = vld [vmem:[%s162_s1 + $0x10] sm:$0xff]  ;;  %v17_v2 = vld [vmem:[%s162_s1 + $0x8] sm:$0xff] }
   0x2   :  { %40 = vmatpush.msra.mxu0 %v19_v0 }
   0x3   :  { %8 = vsyncpa [#allocation3], 0  ;;  %v16_v3 = vld [vmem:[%s162_s1] sm:$0xff]  ;;  %vm24_vm0 = vcmask 261120   ;;  %vm67_vm4 = vcmask 130048  }
   0x4   :  { %41 = vmatpush.msra.mxu0 %v18_v1  ;;  %v15_v4 = vld [vmem:[%s161_s0] sm:$0xff]  ;;  %s119_s0 = smov [#allocation2]  }
   0x5   :  { %v88_v5 = vld [vmem:[%s163_s2] ss:$0 sm:$0xff]  ;;  %s74_s1 = sshll.u32 %s119_s0, 4  ;;  %s76_s2 = sshll.u32 %s164_s3, 4  ;;  %s75_s1 = int_to_ptr.vmem [resolvable:$true] %s74_s1  ;;  %s77_s2 = int_to_ptr.hbm [resolvable:$true] %s76_s2 }
   0x6   :  { %42 = vmatpush.msra.mxu0 %v17_v2 }
   0x8   :  { %43 = vmatpush.msra.mxu0 %v16_v3 }
   0x9   :  { %85 = vmatmul.msk.f32.vlgmr.msra.gmra.mxu0 %vm24_vm0, %v15_v4 }
  0x86   :  { %v45_v6 = vpop.f32.mrf.mxu0 }
  0x87   :  { %v46_v7 = vadd.f32 %v88_v5, %v45_v6 }
  0x89   :  { %v86_v8 = vmul.f32 -1.442695, %v46_v7 }
  0x8b   :  { %89 = vpow2.f32 %v86_v8 }
  0x91   :  { %v90_v9 = vpop.eup %89 }
  0x92   :  { %v51_v10 = vadd.f32 1.0, %v90_v9 }
  0x94   :  { %91 = vrcp.f32 %v51_v10  ;;  %v63_v14 = vand.u32 2147483648, %v51_v10  ;;  %v61_v16 = vand.u32 2147483647, %v51_v10  ;;  %vm57_vm2 = vweird.f32 %v51_v10 }
  0x96   :  { %v64_v18 = vor.u32 1.1754944e-38, %v63_v14  ;;  %vm62_vm5 = vcmp.eq.f32.partialorder %v61_v16, 8.507059e+37 }
  0x9a   :  { %v92_v11 = vpop.eup %91 }
  0x9b   :  { %v53_v12 = vmul.f32 %v92_v11, %v51_v10  ;;  %vm58_vm1 = vweird.f32 %v92_v11 }
  0x9c   :  { %vm59_vm3 = vmor %vm57_vm2, %vm58_vm1 }
  0x9d   :  { %v54_v13 = vsub.f32 1.0, %v53_v12 }
  0x9f   :  { %v55_v15 = vmul.f32 %v92_v11, %v54_v13 }
  0xa1   :  { %v56_v17 = vadd.f32 %v92_v11, %v55_v15 }
  0xa3   :  { %v60_v19 = vsel %vm59_vm3, %v92_v11, %v56_v17 }
  0xa4   :  { %v65_v20 = vsel %vm62_vm5, %v64_v18, %v60_v19 }
  0xa5   :  { %68 = vst.msk [vmem:[#allocation2] sm:$0xff] %vm67_vm4, %v65_v20 }
  0xa6   :  { %79 = dma.vmem_to_hbm [thread:$0]  %s75_s1, 128, %s77_s2, [#allocation3]  }
  0xa7   :  { %117 = dma.done.wait [#allocation3], 128  }
  0xa8   :  { %118 = vsyncadd [#allocation3], 4294967168 }
  0xa9   :  { %84 = vsyncpa [#allocation3], 1 }

</bundles_post_ra>
